<compile_context>
chip_gen: v5e
topology: v5e:2x2
jax: 0.10.0
libtpu: 0.0.40
codegen_flags: <defaults>
</compile_context>

<pallas_src>
import functools

import jax
import jax.numpy as jnp
from jax.experimental import pallas as pl
from jax.experimental.pallas import tpu as pltpu

EPS = 1e-5  # PyTorch nn.LayerNorm default


def _round_up(a: int, b: int) -> int:
    return (a + b - 1) // b * b


def _vmem_capacity_bytes() -> int:
    """Physical per-core VMEM; conservative 64 MiB fallback (v7x)."""
    try:
        info = pltpu.get_tpu_info()
        for name in ("vmem_capacity_bytes", "vmem_size_bytes", "vmem_bytes"):
            v = getattr(info, name, None)
            if v:
                return int(v)
    except Exception:
        pass
    return 64 * 1024 * 1024


def _pick_row_tile(budget_bytes, d_pad, tdn, x_isz, y_isz, out_isz, w_isz,
                   row_align) -> int:
    """Largest row tile whose double-buffered working set fits the budget.

    Budget model (per review): 2x(tn x d_pad) x-buffers + 1x(tn x d_pad) scratch
    + 2x(d_pad x tdn) W buffers + 2x(tn x tdn) out buffers + small residents.
    """
    fixed = 2 * d_pad * tdn * w_isz + 6 * d_pad * 4 + 4 * tdn * 4
    per_row = 2 * d_pad * x_isz + d_pad * y_isz + 2 * tdn * out_isz
    avail = budget_bytes - fixed
    if avail <= per_row * row_align:
        return row_align
    tn = (avail // per_row) // row_align * row_align
    # Cap to bound the per-tile LN prologue / last-tile padding waste.
    return int(min(tn, 4096))


def _ln_fn_kernel(x_ref, gamma_ref, beta_ref, w_ref, b_ref, o_ref, y_ref, *,
                  d_actual, d_pad):
    """Row tile (TN, Dp) of LayerNorm + column tile (Dp, TDN) of the Linear.

    Grid = (row_tiles, col_tiles), column axis innermost.  Normalized rows are
    materialized once per row tile (j == 0) into VMEM scratch `y_ref` and
    reused for every output-column tile.
    """
    j = pl.program_id(1)

    @pl.when(j == 0)
    def _():
        x = x_ref[...].astype(jnp.float32)
        inv_d = jnp.float32(1.0 / d_actual)
        # Two-pass statistics (more stable than E[x^2]-E[x]^2).  Padded lanes
        # of x are zero, so sum(x) is exact; mask padded lanes of the centered
        # values so they do not pollute the variance.
        mean = jnp.sum(x, axis=-1, keepdims=True) * inv_d
        centered = x - mean
        if d_pad != d_actual:
            lane = jax.lax.broadcasted_iota(jnp.int32, x.shape, 1)
            centered = jnp.where(lane < d_actual, centered, 0.0)
        var = jnp.sum(centered * centered, axis=-1, keepdims=True) * inv_d
        inv_std = jax.lax.rsqrt(var + EPS)
        # Fold gamma into the normalizer multiplier; padded lanes have
        # gamma = beta = 0, so they normalize to exactly 0.
        scale = gamma_ref[...].astype(jnp.float32) * inv_std
        y = centered * scale + beta_ref[...].astype(jnp.float32)
        y_ref[...] = y.astype(y_ref.dtype)

    # MXU matmul in the scratch/W dtype (bf16 when mxu_bf16); f32 accumulation.
    acc = jnp.dot(y_ref[...], w_ref[...], preferred_element_type=jnp.float32)
    acc = acc + b_ref[...].astype(jnp.float32)
    o_ref[...] = acc.astype(o_ref.dtype)


def layer_normalize(x, gamma, beta, w, b, *, tn=None, tdn=256, mxu_bf16=None,
                    vmem_limit_bytes=None):
    """LayerNormalize(dim, fn=Linear): fn(LayerNorm(x)).

    x: (B, S, D); gamma/beta: (D,); w: (D, Dout); b: (Dout,) -> (B, S, Dout).

    tn:   row tile; None -> auto-sized to the VMEM budget (biggest that fits,
          which minimizes W re-streaming from HBM).
    tdn:  output-column tile (kept a multiple of 128; 256 default).
    mxu_bf16: None -> bf16 MXU operands only when x is bf16; True -> also cast
          the normalized scratch and W to bf16 for f32 inputs (opt-in accuracy
          trade for ~4-8x MXU rate and half the scratch/W VMEM).
    vmem_limit_bytes: None -> ~75% of physical VMEM (96 MiB on v5e/v6e,
          48 MiB on v7x).
    """
    B, S, D = x.shape
    Dout = w.shape[1]
    N = B * S

    if mxu_bf16 is None:
        mxu_bf16 = (x.dtype == jnp.bfloat16)
    mm_dtype = jnp.bfloat16 if mxu_bf16 else x.dtype

    x_isz = jnp.dtype(x.dtype).itemsize
    y_isz = jnp.dtype(mm_dtype).itemsize
    row_align = max(8, 32 // max(x_isz, 1), 32 // max(y_isz, 1))

    budget = int(vmem_limit_bytes) if vmem_limit_bytes else int(
        _vmem_capacity_bytes() * 3 // 4)
    tile_budget = max(budget - (4 << 20), budget // 2)

    # --- lane dims -> multiples of 128; rows -> multiples of row_align.
    d_pad = _round_up(D, 128)
    tdn_eff = min(_round_up(tdn, 128), _round_up(Dout, 128))
    dout_pad = _round_up(Dout, tdn_eff)

    if tn is None:
        tn = _pick_row_tile(tile_budget, d_pad, tdn_eff, x_isz, y_isz, x_isz,
                            y_isz, row_align)
    tn = _round_up(max(int(tn), row_align), row_align)

    n_rows = _round_up(N, row_align)
    tn_cap = n_rows
    if n_rows >= 2 * row_align:
        # Ensure >= 2 row tiles so both v7x TensorCores get work.
        tn_cap = _round_up((n_rows + 1) // 2, row_align)
    tn_eff = min(tn, tn_cap)
    n_pad = _round_up(N, tn_eff)

    # --- only pad when actually needed (aligned shapes pass straight through).
    x2 = x.reshape(N, D)
    if n_pad != N or d_pad != D:
        x2 = jnp.zeros((n_pad, d_pad), x.dtype).at[:N, :D].set(x2)

    if d_pad == D:
        gamma2 = gamma.reshape(1, D)
        beta2 = beta.reshape(1, D)
    else:
        gamma2 = jnp.zeros((1, d_pad), gamma.dtype).at[0, :D].set(gamma)
        beta2 = jnp.zeros((1, d_pad), beta.dtype).at[0, :D].set(beta)

    w2 = w.astype(mm_dtype)
    if d_pad != D or dout_pad != Dout:
        w2 = jnp.zeros((d_pad, dout_pad), mm_dtype).at[:D, :Dout].set(w2)

    if dout_pad == Dout:
        b2 = b.reshape(1, Dout)
    else:
        b2 = jnp.zeros((1, dout_pad), b.dtype).at[0, :Dout].set(b)

    grid = (n_pad // tn_eff, dout_pad // tdn_eff)

    out = pl.pallas_call(
        functools.partial(_ln_fn_kernel, d_actual=D, d_pad=d_pad),
        out_shape=jax.ShapeDtypeStruct((n_pad, dout_pad), x.dtype),
        grid=grid,
        in_specs=[
            pl.BlockSpec((tn_eff, d_pad), lambda i, j: (i, 0)),    # x row tile
            pl.BlockSpec((1, d_pad), lambda i, j: (0, 0)),         # gamma (resident)
            pl.BlockSpec((1, d_pad), lambda i, j: (0, 0)),         # beta (resident)
            pl.BlockSpec((d_pad, tdn_eff), lambda i, j: (0, j)),   # W column tile
            pl.BlockSpec((1, tdn_eff), lambda i, j: (0, j)),       # bias column tile
        ],
        out_specs=pl.BlockSpec((tn_eff, tdn_eff), lambda i, j: (i, j)),
        scratch_shapes=[pltpu.VMEM((tn_eff, d_pad), mm_dtype)],    # normalized rows
        compiler_params=pltpu.CompilerParams(
            dimension_semantics=("parallel", "arbitrary"),
            vmem_limit_bytes=budget,
        ),
    )(x2, gamma2, beta2, w2, b2)

    if n_pad == N and dout_pad == Dout:
        return out.reshape(B, S, Dout)
    return out[:N, :Dout].reshape(B, S, Dout)


def _reference(x, gamma, beta, w, b):
    xf = x.astype(jnp.float32)
    mean = jnp.mean(xf, axis=-1, keepdims=True)
    var = jnp.mean((xf - mean) ** 2, axis=-1, keepdims=True)
    xhat = (xf - mean) / jnp.sqrt(var + EPS)
    y = xhat * gamma + beta
    return (y @ w + b).astype(x.dtype)


if __name__ == "__main__":
    key = jax.random.PRNGKey(0)
    B, S, D = 2, 8, 32
    Dout = D
    k_x, k_w, k_b = jax.random.split(key, 3)

    x = jax.random.normal(k_x, (B, S, D), dtype=jnp.float32)

    # Deterministic parameter init (synthetic, not a checkpoint load):
    # LayerNorm: gamma=1, beta=0 (PyTorch defaults).
    gamma = jnp.ones((D,), dtype=jnp.float32)
    beta = jnp.zeros((D,), dtype=jnp.float32)
    # fn = Linear(D, Dout): weight stored as (in, out) for y @ W.
    w = jax.random.normal(k_w, (D, Dout), dtype=jnp.float32) * (1.0 / jnp.sqrt(D))
    b = jax.random.normal(k_b, (Dout,), dtype=jnp.float32) * 0.01

    ref = _reference(x, gamma, beta, w, b)

    # Default (accuracy-preserving f32 MXU path for f32 inputs).
    out = layer_normalize(x, gamma, beta, w, b)
    jax.block_until_ready(out)
    assert out.shape == (B, S, Dout)
    assert jnp.allclose(out, ref, atol=1e-4, rtol=1e-4)

    # Opt-in bf16 MXU operand path (perf mode), looser tolerance.
    out_bf16 = layer_normalize(x, gamma, beta, w, b, mxu_bf16=True)
    jax.block_until_ready(out_bf16)
    assert out_bf16.shape == (B, S, Dout)
    assert jnp.allclose(out_bf16, ref, atol=5e-2, rtol=5e-2)

    print("KERNEL_OK")
</pallas_src>

<mosaic_0001>
module attributes {stable_mosaic.version = 11 : i64} {
  func.func @_ln_fn_kernel(%arg0: i32, %arg1: i32, %arg2: memref<8x128xf32, #tpu.memory_space<vmem>>, %arg3: memref<1x128xf32, #tpu.memory_space<vmem>>, %arg4: memref<1x128xf32, #tpu.memory_space<vmem>>, %arg5: memref<128x128xf32, #tpu.memory_space<vmem>>, %arg6: memref<1x128xf32, #tpu.memory_space<vmem>>, %arg7: memref<8x128xf32, #tpu.memory_space<vmem>>, %arg8: memref<8x128xf32, #tpu.memory_space<vmem>>) attributes {dimension_semantics = [#tpu.dimension_semantics<parallel>, #tpu.dimension_semantics<arbitrary>], iteration_bounds = array<i64: 2, 1>, scalar_prefetch = 0 : i64, scratch_operands = 1 : i64, tpu.core_type = #tpu.core_type<tc>, window_params = [{transform_indices = @transform_0, window_bounds = array<i64: 8, 128>}, {pipeline_mode = #tpu.pipeline_mode<synchronous>, transform_indices = @transform_1, window_bounds = array<i64: 1, 128>}, {pipeline_mode = #tpu.pipeline_mode<synchronous>, transform_indices = @transform_2, window_bounds = array<i64: 1, 128>}, {transform_indices = @transform_3, window_bounds = array<i64: 128, 128>}, {transform_indices = @transform_4, window_bounds = array<i64: 1, 128>}, {transform_indices = @transform_5, window_bounds = array<i64: 8, 128>}]} {
    %c0_i32 = arith.constant 0 : i32
    %0 = arith.cmpi eq, %arg1, %c0_i32 : i32
    %1 = arith.extui %0 : i1 to i32
    %c0_i32_0 = arith.constant 0 : i32
    %2 = arith.cmpi ne, %1, %c0_i32_0 : i32
    scf.if %2 {
      %c0_8 = arith.constant 0 : index
      %c0_9 = arith.constant 0 : index
      %10 = vector.load %arg2[%c0_8, %c0_9] : memref<8x128xf32, #tpu.memory_space<vmem>>, vector<8x128xf32>
      %cst_10 = arith.constant dense<0.000000e+00> : vector<8xf32>
      %11 = vector.multi_reduction <add>, %10, %cst_10 [1] : vector<8x128xf32> to vector<8xf32>
      %12 = vector.shape_cast %11 : vector<8xf32> to vector<8x1xf32>
      %cst_11 = arith.constant 3.125000e-02 : f32
      %13 = vector.broadcast %cst_11 : f32 to vector<8x1xf32>
      %14 = arith.mulf %12, %13 : vector<8x1xf32>
      %15 = vector.broadcast %14 : vector<8x1xf32> to vector<8x128xf32>
      %16 = arith.subf %10, %15 : vector<8x128xf32>
      %17 = tpu.iota {dimensions = array<i32: 1>} : vector<8x128xi32>
      %c32_i32 = arith.constant 32 : i32
      %18 = vector.broadcast %c32_i32 : i32 to vector<8x128xi32>
      %19 = arith.cmpi slt, %17, %18 : vector<8x128xi32>
      %cst_12 = arith.constant 0.000000e+00 : f32
      %20 = vector.broadcast %cst_12 : f32 to vector<8x128xf32>
      %21 = arith.select %19, %16, %20 : vector<8x128xi1>, vector<8x128xf32>
      %22 = arith.mulf %21, %21 : vector<8x128xf32>
      %cst_13 = arith.constant dense<0.000000e+00> : vector<8xf32>
      %23 = vector.multi_reduction <add>, %22, %cst_13 [1] : vector<8x128xf32> to vector<8xf32>
      %24 = vector.shape_cast %23 : vector<8xf32> to vector<8x1xf32>
      %cst_14 = arith.constant 3.125000e-02 : f32
      %25 = vector.broadcast %cst_14 : f32 to vector<8x1xf32>
      %26 = arith.mulf %24, %25 : vector<8x1xf32>
      %cst_15 = arith.constant 9.99999974E-6 : f32
      %27 = vector.broadcast %cst_15 : f32 to vector<8x1xf32>
      %28 = arith.addf %26, %27 : vector<8x1xf32>
      %29 = math.rsqrt %28 : vector<8x1xf32>
      %c0_16 = arith.constant 0 : index
      %c0_17 = arith.constant 0 : index
      %30 = vector.load %arg3[%c0_16, %c0_17] : memref<1x128xf32, #tpu.memory_space<vmem>>, vector<1x128xf32>
      %31 = vector.broadcast %30 : vector<1x128xf32> to vector<8x128xf32>
      %32 = vector.broadcast %29 : vector<8x1xf32> to vector<8x128xf32>
      %33 = arith.mulf %31, %32 : vector<8x128xf32>
      %34 = arith.mulf %21, %33 : vector<8x128xf32>
      %c0_18 = arith.constant 0 : index
      %c0_19 = arith.constant 0 : index
      %35 = vector.load %arg4[%c0_18, %c0_19] : memref<1x128xf32, #tpu.memory_space<vmem>>, vector<1x128xf32>
      %36 = vector.broadcast %35 : vector<1x128xf32> to vector<8x128xf32>
      %37 = arith.addf %34, %36 : vector<8x128xf32>
      %c0_20 = arith.constant 0 : index
      %c0_21 = arith.constant 0 : index
      %38 = vector.load %arg8[%c0_20, %c0_21] : memref<8x128xf32, #tpu.memory_space<vmem>>, vector<8x128xf32>
      tpu.vector_store %arg8[%c0_20, %c0_21], %37 {strides = array<i32>} : memref<8x128xf32, #tpu.memory_space<vmem>>, vector<8x128xf32>,
    } else {
    }
    %c0 = arith.constant 0 : index
    %c0_1 = arith.constant 0 : index
    %3 = vector.load %arg8[%c0, %c0_1] : memref<8x128xf32, #tpu.memory_space<vmem>>, vector<8x128xf32>
    %c0_2 = arith.constant 0 : index
    %c0_3 = arith.constant 0 : index
    %4 = vector.load %arg5[%c0_2, %c0_3] : memref<128x128xf32, #tpu.memory_space<vmem>>, vector<128x128xf32>
    %cst = arith.constant dense<0.000000e+00> : vector<8x128xf32>
    %5 = tpu.matmul %3, %4, %cst {dimension_numbers = #tpu.dot_dimension_numbers<[1], [0], [0], [1], [0, 0, 1, 1], [], []>} : vector<8x128xf32>, vector<128x128xf32>, vector<8x128xf32> -> vector<8x128xf32>
    %c0_4 = arith.constant 0 : index
    %c0_5 = arith.constant 0 : index
    %6 = vector.load %arg6[%c0_4, %c0_5] : memref<1x128xf32, #tpu.memory_space<vmem>>, vector<1x128xf32>
    %7 = vector.broadcast %6 : vector<1x128xf32> to vector<8x128xf32>
    %8 = arith.addf %5, %7 : vector<8x128xf32>
    %c0_6 = arith.constant 0 : index
    %c0_7 = arith.constant 0 : index
    %9 = vector.load %arg7[%c0_6, %c0_7] : memref<8x128xf32, #tpu.memory_space<vmem>>, vector<8x128xf32>
    tpu.vector_store %arg7[%c0_6, %c0_7], %8 {strides = array<i32>} : memref<8x128xf32, #tpu.memory_space<vmem>>, vector<8x128xf32>,
    return
  }
  func.func @transform_0(%arg0: i32, %arg1: i32) -> (i32, i32) {
    %c0_i32 = arith.constant 0 : i32
    %c0_i32_0 = arith.constant 0 : i32
    return %arg0, %c0_i32 : i32, i32
  }
  func.func @transform_1(%arg0: i32, %arg1: i32) -> (i32, i32) {
    %c0_i32 = arith.constant 0 : i32
    %c0_i32_0 = arith.constant 0 : i32
    %c0_i32_1 = arith.constant 0 : i32
    return %c0_i32, %c0_i32_0 : i32, i32
  }
  func.func @transform_2(%arg0: i32, %arg1: i32) -> (i32, i32) {
    %c0_i32 = arith.constant 0 : i32
    %c0_i32_0 = arith.constant 0 : i32
    %c0_i32_1 = arith.constant 0 : i32
    return %c0_i32, %c0_i32_0 : i32, i32
  }
  func.func @transform_3(%arg0: i32, %arg1: i32) -> (i32, i32) {
    %c0_i32 = arith.constant 0 : i32
    %c0_i32_0 = arith.constant 0 : i32
    return %c0_i32, %arg1 : i32, i32
  }
  func.func @transform_4(%arg0: i32, %arg1: i32) -> (i32, i32) {
    %c0_i32 = arith.constant 0 : i32
    %c0_i32_0 = arith.constant 0 : i32
    return %c0_i32, %arg1 : i32, i32
  }
  func.func @transform_5(%arg0: i32, %arg1: i32) -> (i32, i32) {
    %c0_i32 = arith.constant 0 : i32
    return %arg0, %arg1 : i32, i32
  }
}

</mosaic_0001>

<bundles_post_ra>
// kernel: tpu_custom_call.1
= control target key start
LH: loop header
LB: loop body
LE: loop exit
PB: predicated region body
PF: predicated region fallthrough
CT: control target
= control target key end

     0   :  { %10 = vsyncpa [#allocation4], 0  ;;  %s995_s0 = inlined_call_operand.hbm [shape: f32[16,128], index: 0, kind: input, shape index: {}]   ;;  %s996_s1 = inlined_call_operand.hbm [shape: f32[1,128], index: 1, kind: input, shape index: {}]   ;;  %s997_s2 = inlined_call_operand.vmem [shape: f32[1,128], index: 2, kind: input, shape index: {}]   ;;  %s998_s3 = inlined_call_operand.hbm [shape: f32[128,128], index: 3, kind: input, shape index: {}]   ;;  %s999_s4 = inlined_call_operand.vmem [shape: f32[1,128], index: 4, kind: input, shape index: {}]   ;;  %s1000_s5 = inlined_call_operand.hbm [shape: f32[16,128], index: 5, kind: output, shape index: {}]  }
   0x1   :  { %12 = vsyncpa [#allocation4 + $0x1], 0 }
   0x2   :  { %13 = vsyncpa [#allocation7], 0 }
   0x3   :  { %14 = vsyncpa [#allocation5], 0 }
   0x4   :  { %16 = vsyncpa [#allocation5 + $0x1], 0  ;;  %s839_s18 = smov 0   ;;  %s841_s19 = smov 0  }
   0x5   :  { %s843_s20 = smov 0   ;;  %s845_s21 = smov 0  }
   0x6   :  { %s847_s22 = smov 0   ;;  %s849_s23 = smov 0  }
   0x7 LB: > { %s519_s24 = sadd.s32 4294967295, %s803_s23   ;;  %s520_s25 = sadd.s32 4294967294, %s803_s23   ;;  %s803_s23 = sphi %s849_s23, %s22_s23   ;;  %s799_s22 = sphi %s847_s22, %s1010_s22   ;;  %s795_s21 = sphi %s845_s21, %s1009_s21   ;;  %s791_s20 = sphi %s843_s20, %s1008_s20   ;;  %s787_s19 = sphi %s841_s19, %s1007_s19   ;;  %s783_s18 = sphi %s839_s18, %s1006_s18  }
   0x8   : > { %p54_p0 = scmp.ne.s32.totalorder %s787_s19, %s783_s18  ;;  %p875_p1 = scmp.eq.s32.totalorder %s519_s24, 0 }
   0x9   : > { %p180_p2 = scmp.eq.s32.totalorder %s520_s25, 1  ;;  %p521_p4 = scmp.ge.s32.totalorder %s803_s23, 1 }
   0xa   : > { %p881_p3 = por %p875_p1, %p54_p0  ;;  %p187_p6 = scmp.lt.s32.totalorder %s803_s23, 3 }
   0xb   : > { %p886_p5 = por %p180_p2, %p54_p0  ;;  %s199_s6 = sshll.u32 %s996_s1, 4  ;;  %s200_s6 = int_to_ptr.hbm [resolvable:$true] %s199_s6 }
   0xc   : > { %p894_p7 = pnand %p521_p4, %p187_p6  ;;  %p525_p8 = scmp.ge.s32.totalorder %s803_s23, 2 }
   0xd   : > { %s805_s8 = smov [#allocation6]   ;;  %s215_s12 = sshll.u32 %s998_s3, 4  ;;  %s216_s12 = int_to_ptr.hbm [resolvable:$true] %s215_s12 }
   0xe   : > { %p549_p9 = pneg %p894_p7  ;;  %s201_s9 = sshll.u32 %s805_s8, 4  ;;  %s202_s9 = int_to_ptr.vmem [resolvable:$true] %s201_s9 }
   0xf   : > { %s806_s13 = smov [#allocation8]   ;;  %s807_s15 = smov 128  }
  0x10   : > { %p550_p10 = pnand %p549_p9, %p875_p1  ;;  %s217_s14 = sshll.u32 %s806_s13, 4  ;;  %s218_s14 = int_to_ptr.vmem [resolvable:$true] %s217_s14 }
  0x11   : > { %s808_s16 = smov 8   ;;  %p174_p11 = scmp.eq.s32.totalorder %s519_s24, 1 }
  0x12   : > { %552 = dma.hbm_to_vmem [thread:$0]  (!%p550_p10), %s200_s6, 16, %s202_s9, [#allocation7]  }
  0x13   : > { %555 = dma.hbm_to_vmem [thread:$0]  (!%p550_p10), %s216_s12, 2048, %s218_s14, [#allocation7], %s807_s15, %s807_s15, %s808_s16  }
  0x14   : > { %s34_s17 = sadd.s32 1, %s799_s22  ;;  %s41_s25 = sadd.s32 1, %s791_s20 }
  0x15   : > { %p36_p12 = scmp.ge.s32.totalorder %s34_s17, 2  ;;  %p48_p13 = scmp.ne.s32.totalorder %s791_s20, %s787_s19 }
  0x16   : > { %p49_p0 = scmp.eq.s32.totalorder %s803_s23, 0  ;;  %p566_p4 = scmp.lt.s32.totalorder %s803_s23, 2 }
  0x17   : > { %s1012_s17 = smov (%p36_p12, %s34_s17), 0  ;;  %p915_p2 = por %p174_p11, %p48_p13 }
  0x18   : > { %s38_s30 = ssub.s32 %s799_s22, %s1012_s17  ;;  %s237_s6 = sand.u32 1, %s791_s20  }
  0x19   : > { %p39_p6 = scmp.eq.s32.totalorder %s38_s30, 0  ;;  %p50_p9 = por %p49_p0, %p48_p13 }
  0x1a   : > { %s526_s8 = sshll.u32 %s237_s6, 3  ;;  %s527_s24 = sshll.u32 %s799_s22, 3 }
  0x1b   : > { %s925_s9 = scalar_select %p39_p6, %s791_s20, %s41_s25  }
  0x1c   : > { %s245_s12 = scalar_lea.hbm %s995_s0, %s527_s24  ;;  %s241_s14 = scalar_lea.vmem [#allocation3], %s526_s8 }
  0x1d   : > { %s247_s13 = sshll.u32 %s245_s12, 4  ;;  %s249_s15 = sshll.u32 %s241_s14, 4  ;;  %s248_s13 = int_to_ptr.hbm [resolvable:$true] %s247_s13  ;;  %s250_s15 = int_to_ptr.vmem [resolvable:$true] %s249_s15 }
  0x1e   : > { %p557_p10 = pnand %p566_p4, %p50_p9  ;;  %s238_s16 = scalar_lea.sflag [#allocation4], %s237_s6 }
  0x1f   : > { %258 = sbr.rel (%p894_p7) target bundleno = 438 (0x1b6), region = 40  ;;  %s935_s25 = sand.u32 (!%p894_p7), 1, %s787_s19  }
  0x20   : > { %559 = dma.hbm_to_vmem [thread:$0]  (!%p557_p10), %s248_s13, 128, %s250_s15, %s238_s16  }
  0x21   : > { %s529_s30 = sshll.u32 (!%p894_p7), %s935_s25, 3  ;;  %s261_s24 = scalar_lea.sflag (!%p894_p7), [#allocation4], %s935_s25 }
  0x22   : > { %s264_s8 = scalar_lea.vmem (!%p894_p7), [#allocation3], %s529_s30 }
  0x24   : > { %770 = dma.done.wait (%p881_p3), %s261_s24, 128  }
  0x25   : > { %772 = vsyncadd (%p881_p3), %s261_s24, 4294967168 }
  0x26   : > { %774 = dma.done.wait (%p875_p1), [#allocation7], 2064  }
  0x27   : > { %776 = vsyncadd (%p875_p1), [#allocation7], 4294965232  ;;  %v312_v0 = vld [vmem:[%s264_s8] sm:$0xff]  ;;  %v317_v3 = vlaneseq  ;;  %v361_v11 = vld [vmem:[#allocation8 + $0x60] sm:$0xff]  ;;  %s534_s7 = sshll.u32 %s795_s21, 3  ;;  %s304_s14 = scalar_lea.vmem [#allocation9], %s529_s30 }
  0x28   : > { %313 = vadd.xlane.f32.xlu0 %v312_v0  ;;  %v364_v1 = vld [vmem:[#allocation8 + $0x78] sm:$0xff]  ;;  %v363_v2 = vld [vmem:[#allocation8 + $0x70] sm:$0xff]  ;;  %v362_v10 = vld [vmem:[#allocation8 + $0x68] sm:$0xff]  ;;  %s402_s11 = scalar_lea.hbm %s1000_s5, %s534_s7  ;;  %s404_s15 = sshll.u32 %s304_s14, 4  ;;  %s405_s15 = int_to_ptr.vmem [resolvable:$true] %s404_s15 }
  0x29   : > { %369 = vmatpush.msra.mxu0 %v364_v1  ;;  %v318_v4 = vand.u32 127, %v317_v3  ;;  %v360_v12 = vld [vmem:[#allocation8 + $0x58] sm:$0xff]  ;;  %v359_v13 = vld [vmem:[#allocation8 + $0x50] sm:$0xff]  ;;  %v358_v14 = vld [vmem:[#allocation8 + $0x48] sm:$0xff]  ;;  %s406_s16 = sshll.u32 %s402_s11, 4  ;;  %s391_s24 = scalar_lea.sflag [#allocation5], %s935_s25  ;;  %s407_s16 = int_to_ptr.hbm [resolvable:$true] %s406_s16 }
  0x2a   : > { %v357_v15 = vld [vmem:[#allocation8 + $0x40] sm:$0xff]  ;;  %v356_v16 = vld [vmem:[#allocation8 + $0x38] sm:$0xff]  ;;  %v355_v17 = vld [vmem:[#allocation8 + $0x30] sm:$0xff]  ;;  %s731_s21 = sshra.s32 %s407_s16, 4  ;;  %s737_s7 = scalar_lea.hbm %s1000_s5, 16  ;;  %s732_s21 = int_to_ptr.hbm [resolvable:$true] %s731_s21 }
  0x2b   : > { %370 = vmatpush.msra.mxu0 %v363_v2  ;;  %vm319_vm0 = vcmp.lt.s32.totalorder %v318_v4, 32  ;;  %v354_v18 = vld [vmem:[#allocation8 + $0x28] sm:$0xff]  ;;  %v353_v19 = vld [vmem:[#allocation8 + $0x20] sm:$0xff]  ;;  %v352_v20 = vld [vmem:[#allocation8 + $0x18] sm:$0xff]  ;;  %s733_s8 = scalar_lea.hbm %s732_s21, 8  ;;  %p738_p11 = scmp.lt.s32.totalorder %s732_s21, %s1000_s5 }
  0x2c   : > { %v351_v21 = vld [vmem:[#allocation8 + $0x10] sm:$0xff]  ;;  %v350_v22 = vld [vmem:[#allocation8 + $0x8] sm:$0xff]  ;;  %v349_v23 = vld [vmem:[#allocation8] sm:$0xff]  ;;  %p734_p1 = scmp.ne.s32.totalorder %s732_s21, %s733_s8  ;;  %p739_p12 = scmp.lt.s32.totalorder %s737_s7, %s733_s8 }
  0x2d   : > { %371 = vmatpush.msra.mxu0 %v362_v10  ;;  %v622_v32 = vld [vmem:[#allocation6] ss:$0 sm:$0xff]  ;;  %v623_v36 = vld [vmem:[%s997_s2] ss:$0 sm:$0xff] }
  0x2e   : > { %v624_v39 = vld [vmem:[%s999_s4] ss:$0 sm:$0xff]  ;;  %p735_p3 = pnand %p734_p1, %p915_p2  ;;  %p740_p13 = por %p739_p12, %p738_p11 }
  0x2f   : > { %372 = vmatpush.msra.mxu0 %v361_v11 }
  0x30   : > { %p736_p7 = pneg %p735_p3 }
  0x31   : > { %373 = vmatpush.msra.mxu0 %v360_v12 }
  0x32   : > { %p741_p0 = pnand %p740_p13, %p736_p7 }
  0x33   : > { %374 = vmatpush.msra.mxu0 %v359_v13 }
  0x35   : > { %375 = vmatpush.msra.mxu0 %v358_v14 }
  0x37   : > { %376 = vmatpush.msra.mxu0 %v357_v15 }
  0x39   : > { %377 = vmatpush.msra.mxu0 %v356_v16 }
  0x3b   : > { %378 = vmatpush.msra.mxu0 %v355_v17 }
  0x3d   : > { %379 = vmatpush.msra.mxu0 %v354_v18 }
  0x3f   : > { %380 = vmatpush.msra.mxu0 %v353_v19 }
  0x41   : > { %381 = vmatpush.msra.mxu0 %v352_v20 }
  0x43   : > { %382 = vmatpush.msra.mxu0 %v351_v21 }
  0x45   : > { %383 = vmatpush.msra.mxu0 %v350_v22 }
  0x47   : > { %384 = vmatpush.msra.mxu0 %v349_v23 }
  0x9b   : > { %v314_v5 = vpop.xlane.xlu0 %313 }
  0x9c   : > { %v315_v6 = vmul.f32 0.03125, %v314_v5 }
  0x9e   : > { %v316_v7 = vsub.f32 %v312_v0, %v315_v6 }
  0xa0   : > { %v320_v8 = vsel %vm319_vm0, %v316_v7, 0.0 }
  0xa1   : > { %v321_v9 = vmul.f32 %v320_v8, %v320_v8 }
  0xa3   : > { %322 = vadd.xlane.f32.xlu0 %v321_v9 }
 0x116   : > { %v323_v24 = vpop.xlane.xlu0 %322 }
 0x117   : > { %v324_v25 = vmul.f32 0.03125, %v323_v24 }
 0x119   : > { %v325_v26 = vadd.f32 1e-05, %v324_v25 }
 0x11b   : > { %625 = vrsqrt.f32 %v325_v26  ;;  %vm332_vm2 = vweird.f32 %v325_v26 }
 0x121   : > { %v626_v27 = vpop.eup %625 }
 0x122   : > { %v327_v28 = vmul.f32 %v626_v27, %v325_v26  ;;  %vm333_vm1 = vweird.f32 %v626_v27 }
 0x123   : > { %vm334_vm3 = vmor %vm332_vm2, %vm333_vm1 }
 0x124   : > { %v328_v29 = vmul.f32 %v626_v27, %v327_v28 }
 0x126   : > { %v329_v30 = vmul.f32 0.5, %v328_v29 }
 0x128   : > { %v330_v31 = vsub.f32 1.5, %v329_v30 }
 0x12a   : > { %v331_v33 = vmul.f32 %v626_v27, %v330_v31 }
 0x12c   : > { %v335_v34 = vsel %vm334_vm3, %v626_v27, %v331_v33 }
 0x12d   : > { %v340_v35 = vmul.f32 %v622_v32, %v335_v34 }
 0x12f   : > { %v341_v37 = vmul.f32 %v340_v35, %v320_v8 }
 0x131   : > { %v346_v38 = vadd.f32 %v623_v36, %v341_v37 }
 0x133   : > { %385 = vmatmul.f32.vlgmr.msra.gmra.mxu0 %v346_v38 }
 0x1b0   : > { %v386_v40 = vpop.f32.mrf.mxu0 }
 0x1b1   : > { %v387_v41 = vadd.f32 %v624_v39, %v386_v40 }
 0x1b3   : > { %389 = vst [vmem:[%s304_s14] sm:$0xff] %v387_v41 }
 0x1b4   : > { %744 = shalt.err (!%p741_p0)
}
 0x1b5   : > { %547 = dma.vmem_to_hbm [thread:$0]  (%p915_p2), %s405_s15, 128, %s407_s16, %s391_s24  }
 0x1b6 PF: > { %s418_s25 = sand.u32 1, %s783_s18   ;;  %p561_p4 = pnand %p525_p8, %p886_p5 }
 0x1b7   : > { %s419_s10 = scalar_lea.sflag [#allocation5], %s418_s25 }
 0x1b8   : > { %p562_p6 = pneg %p561_p4 }
 0x1ba   : > { %778 = dma.done.wait (%p562_p6), %s419_s10, 128  }
 0x1bb   : > { %780 = vsyncadd (%p562_p6), %s419_s10, 4294967168  ;;  %s22_s23 = sadd.s32 1, %s803_s23   ;;  %s1006_s18 = smov %s787_s19 }
 0x1bc   : > { %p19_p9 = scmp.ge.s32.totalorder %s22_s23, 4   ;;  %s1007_s19 = smov %s791_s20 }
 0x1bd   : > { %s1008_s20 = smov %s925_s9  ;;  %s1009_s21 = smov %s799_s22 }
 0x1be   : > { %s1010_s22 = smov %s1012_s17  ;;  %21 = sbr.rel (!%p19_p9) target bundleno = 7 (0x7), region = 101 }
 0x1c3   :  { %425 = vsyncpa [#allocation4], 1 }
 0x1c4   :  { %427 = vsyncpa [#allocation4 + $0x1], 1 }
 0x1c5   :  { %428 = vsyncpa [#allocation7], 1 }
 0x1c6   :  { %429 = vsyncpa [#allocation5], 1 }
 0x1c7   :  { %431 = vsyncpa [#allocation5 + $0x1], 1 }

</bundles_post_ra>
